<compile_context>
chip_gen: v7x
topology: tpu7x:2x2x1
jax: 0.10.0
libtpu: 0.0.40
codegen_flags: <defaults>
</compile_context>

<pallas_src>
import functools
import math

import jax
import jax.numpy as jnp
from jax.experimental import pallas as pl
from jax.experimental.pallas import tpu as pltpu

LANE = 128


# ----------------------------------------------------------------------------
# helpers
# ----------------------------------------------------------------------------
def _round_up(x, m):
    return (x + m - 1) // m * m


def _chip_kind():
    try:
        return jax.devices()[0].device_kind.lower()
    except Exception:
        return ""


def _big_vmem_chip():
    kind = _chip_kind()
    return ("v6" in kind) or ("v7" in kind)


def _compute_dtype(dtype):
    d = jnp.dtype(dtype)
    if d in (jnp.dtype(jnp.bfloat16), jnp.dtype(jnp.float16)) and _big_vmem_chip():
        return dtype          # v6e/v7x: bf16-native VPU/EUP, avoid f32 upcast
    return jnp.float32        # v5e / unknown: no bf16 VPU/EUP -> compute in f32


# ----------------------------------------------------------------------------
# kernels
# ----------------------------------------------------------------------------
def _glu_kernel_fast(x_ref, o_ref, *, compute_dtype):
    # x_ref: (1, 2, tr, 128)  -> a = half 0, b = half 1 (single fused DMA)
    a = x_ref[0, 0, :, :].astype(compute_dtype)
    b = x_ref[0, 1, :, :].astype(compute_dtype)
    o_ref[0, :, :] = (a * jax.nn.sigmoid(b)).astype(o_ref.dtype)


def _glu_kernel_general(x_ref, o_ref, *, compute_dtype):
    # x_ref: (1, 2, tc) -> lane-tiled slab of each half for one batch element
    a = x_ref[0, 0:1, :].astype(compute_dtype)
    b = x_ref[0, 1:2, :].astype(compute_dtype)
    o_ref[0, :, :] = (a * jax.nn.sigmoid(b)).astype(o_ref.dtype)


# ----------------------------------------------------------------------------
# wrappers
# ----------------------------------------------------------------------------
def _glu_fast(x):
    """Zero-copy path: nc * prod(spatial) is a multiple of 128."""
    B = x.shape[0]
    nc = x.shape[1] // 2
    spatial = x.shape[2:]
    inner = nc * math.prod(spatial)
    rows = inner // LANE
    xr = x.reshape(B, 2, rows, LANE)                 # free (contiguous) view

    itemsize = jnp.dtype(x.dtype).itemsize
    dtype_scale = max(1, 4 // itemsize)
    sub = 8 * dtype_scale                            # packed sublane tile: 8/16/32
    cap = (8192 if _big_vmem_chip() else 4096) * dtype_scale
    cap = min(cap, 16384)

    # keep >= ~8 total grid steps so megacore sharding + double buffering stay busy
    want_row_steps = max(1, pl.cdiv(8, B))
    tr = min(cap, _round_up(pl.cdiv(rows, want_row_steps), sub))
    tr = max(tr, sub)
    grid = (B, pl.cdiv(rows, tr))

    # 2 input rows + 1 output row per tile row, double-buffered
    vmem_bytes = 2 * 3 * tr * LANE * itemsize
    params = dict(dimension_semantics=("parallel", "parallel"))
    if vmem_bytes > 24 * 1024 * 1024:
        params["vmem_limit_bytes"] = min(vmem_bytes + (8 << 20), 48 << 20)

    kernel = functools.partial(_glu_kernel_fast,
                               compute_dtype=_compute_dtype(x.dtype))
    out = pl.pallas_call(
        kernel,
        out_shape=jax.ShapeDtypeStruct((B, rows, LANE), x.dtype),
        grid=grid,
        in_specs=[pl.BlockSpec((1, 2, tr, LANE), lambda i, j: (i, 0, j, 0))],
        out_specs=pl.BlockSpec((1, tr, LANE), lambda i, j: (i, j, 0)),
        compiler_params=pltpu.CompilerParams(**params),
    )(xr)
    return out.reshape((B, nc) + spatial)


def _glu_general(x):
    """Fallback (inner not a multiple of 128): zero-copy view (B,2,inner),
    lane-dim tiling with a masked ragged last tile. No wrapper-side copies."""
    B = x.shape[0]
    nc = x.shape[1] // 2
    spatial = x.shape[2:]
    inner = nc * math.prod(spatial)
    x3 = x.reshape(B, 2, inner)                      # free (contiguous) view

    itemsize = jnp.dtype(x.dtype).itemsize
    dtype_scale = max(1, 4 // itemsize)
    cap = 512 * LANE * dtype_scale                   # keeps pipeline buffers small
    want_col_steps = max(1, pl.cdiv(8, B))
    tc = min(cap, _round_up(pl.cdiv(inner, want_col_steps), LANE))
    tc = max(tc, LANE)
    grid = (B, pl.cdiv(inner, tc))

    kernel = functools.partial(_glu_kernel_general,
                               compute_dtype=_compute_dtype(x.dtype))
    out = pl.pallas_call(
        kernel,
        out_shape=jax.ShapeDtypeStruct((B, 1, inner), x.dtype),
        grid=grid,
        in_specs=[pl.BlockSpec((1, 2, tc), lambda i, j: (i, 0, j))],
        out_specs=pl.BlockSpec((1, 1, tc), lambda i, j: (i, 0, j)),
        compiler_params=pltpu.CompilerParams(
            dimension_semantics=("parallel", "parallel")),
    )(x3)
    return out.reshape((B, nc) + spatial)


def glu(x):
    """GLU over channel dim 1: x[:, :nc] * sigmoid(x[:, nc:])."""
    assert x.ndim >= 2, "GLU expects (B, C, ...)"
    c = x.shape[1]
    assert c % 2 == 0, "channels do not divide 2!"
    nc = c // 2
    inner = nc * math.prod(x.shape[2:])
    if inner % LANE == 0:
        return _glu_fast(x)
    return _glu_general(x)


# ----------------------------------------------------------------------------
# self-test
# ----------------------------------------------------------------------------
if __name__ == "__main__":
    key = jax.random.PRNGKey(0)
    B, C, H, W = 2, 4, 16, 16                        # channels=4 -> nc=2
    x = jax.random.normal(key, (B, C, H, W), dtype=jnp.float32)

    glu_jit = jax.jit(glu)
    out = glu_jit(x)
    jax.block_until_ready(out)

    nc = C // 2
    ref = x[:, :nc] * jax.nn.sigmoid(x[:, nc:])
    assert out.shape == (B, nc, H, W), out.shape
    assert bool(jnp.allclose(out, ref, rtol=1e-5, atol=1e-6)), "GLU mismatch (fast path)"

    # non-128-aligned shape exercises the general (zero-copy, masked-tail) path
    x2 = jax.random.normal(jax.random.PRNGKey(1), (2, 6, 5, 7), jnp.float32)
    out2 = jax.jit(glu)(x2)
    jax.block_until_ready(out2)
    ref2 = x2[:, :3] * jax.nn.sigmoid(x2[:, 3:])
    assert out2.shape == (2, 3, 5, 7), out2.shape
    assert bool(jnp.allclose(out2, ref2, rtol=1e-5, atol=1e-6)), "GLU mismatch (general path)"

    print("KERNEL_OK")
</pallas_src>

<mosaic_0001>
module attributes {stable_mosaic.version = 11 : i64} {
  func.func @_glu_kernel_fast(%arg0: i32, %arg1: i32, %arg2: memref<1x2x8x128xf32, #tpu.memory_space<vmem>>, %arg3: memref<1x8x128xf32, #tpu.memory_space<vmem>>) attributes {dimension_semantics = [#tpu.dimension_semantics<parallel>, #tpu.dimension_semantics<parallel>], iteration_bounds = array<i64: 2, 1>, scalar_prefetch = 0 : i64, scratch_operands = 0 : i64, tpu.core_type = #tpu.core_type<tc>, window_params = [{transform_indices = @transform_0, window_bounds = array<i64: 1, 2, 8, 128>}, {transform_indices = @transform_1, window_bounds = array<i64: 1, 8, 128>}]} {
    %c0 = arith.constant 0 : index
    %c0_0 = arith.constant 0 : index
    %c0_1 = arith.constant 0 : index
    %c0_2 = arith.constant 0 : index
    %0 = vector.load %arg2[%c0, %c0_0, %c0_1, %c0_2] : memref<1x2x8x128xf32, #tpu.memory_space<vmem>>, vector<1x1x8x128xf32>
    %1 = vector.shape_cast %0 : vector<1x1x8x128xf32> to vector<8x128xf32>
    %c0_3 = arith.constant 0 : index
    %c1 = arith.constant 1 : index
    %c0_4 = arith.constant 0 : index
    %c0_5 = arith.constant 0 : index
    %2 = vector.load %arg2[%c0_3, %c1, %c0_4, %c0_5] : memref<1x2x8x128xf32, #tpu.memory_space<vmem>>, vector<1x1x8x128xf32>
    %3 = vector.shape_cast %2 : vector<1x1x8x128xf32> to vector<8x128xf32>
    %4 = arith.negf %3 : vector<8x128xf32>
    %5 = math.exp %4 : vector<8x128xf32>
    %cst = arith.constant 1.000000e+00 : f32
    %6 = vector.broadcast %cst : f32 to vector<8x128xf32>
    %7 = arith.addf %6, %5 : vector<8x128xf32>
    %8 = arith.divf %6, %7 : vector<8x128xf32>
    %9 = arith.mulf %1, %8 : vector<8x128xf32>
    %c0_6 = arith.constant 0 : index
    %c0_7 = arith.constant 0 : index
    %c0_8 = arith.constant 0 : index
    %10 = vector.load %arg3[%c0_6, %c0_7, %c0_8] : memref<1x8x128xf32, #tpu.memory_space<vmem>>, vector<1x8x128xf32>
    %11 = vector.shape_cast %10 : vector<1x8x128xf32> to vector<8x128xf32>
    %12 = vector.shape_cast %9 : vector<8x128xf32> to vector<1x8x128xf32>
    tpu.vector_store %arg3[%c0_6, %c0_7, %c0_8], %12 {strides = array<i32>} : memref<1x8x128xf32, #tpu.memory_space<vmem>>, vector<1x8x128xf32>,
    return
  }
  func.func @transform_0(%arg0: i32, %arg1: i32) -> (i32, i32, i32, i32) {
    %c0_i32 = arith.constant 0 : i32
    %c0_i32_0 = arith.constant 0 : i32
    %c0_i32_1 = arith.constant 0 : i32
    return %arg0, %c0_i32, %arg1, %c0_i32_0 : i32, i32, i32, i32
  }
  func.func @transform_1(%arg0: i32, %arg1: i32) -> (i32, i32, i32) {
    %c0_i32 = arith.constant 0 : i32
    %c0_i32_0 = arith.constant 0 : i32
    return %arg0, %arg1, %c0_i32 : i32, i32, i32
  }
}

</mosaic_0001>

<bundles_post_ra>
// kernel: glu.1
= control target key start
LH: loop header
LB: loop body
LE: loop exit
PB: predicated region body
PF: predicated region fallthrough
CT: control target
= control target key end

     0   :  { %s611_s6 = smov 0   ;;  %s613_s7 = smov 0   ;;  %s683_s0 = inlined_call_operand.vmem [shape: f32[2,2,4,128], index: 0, kind: input, shape index: {}]   ;;  %s684_s1 = inlined_call_operand.vmem [shape: f32[2,4,128], index: 1, kind: output, shape index: {}]  }
   0x1   :  { %s615_s8 = smov 0   ;;  %s617_s9 = smov 0  }
   0x2   :  { %s619_s10 = smov 0  }
   0x3 LB: > { %s23_s11 = sadd.s32 1, %s587_s9  ;;  %s392_s12 = sadd.s32 4294967295, %s591_s10   ;;  %s591_s10 = sphi %s619_s10, %s11_s10   ;;  %s587_s9 = sphi %s617_s9, %s689_s9   ;;  %s583_s8 = sphi %s615_s8, %s688_s8   ;;  %s579_s7 = sphi %s613_s7, %s687_s7   ;;  %s575_s6 = sphi %s611_s6, %s686_s6  }
   0x4   : > { %p25_p0 = scmp.ge.s32.totalorder %s23_s11, 2  ;;  %p39_p1 = scmp.ne.s32.totalorder %s579_s7, %s575_s6 }
   0x5   : > { %p40_p2 = scmp.eq.s32.totalorder %s591_s10, 0  ;;  %p71_p4 = scmp.eq.s32.totalorder %s392_s12, 1 }
   0x6   : > { %s691_s11 = smov (%p25_p0, %s23_s11), 0  ;;  %s32_s14 = sadd.s32 1, %s579_s7 }
   0x7   : > { %p41_p3 = por %p40_p2, %p39_p1  ;;  %s27_s13 = ssub.s32 %s587_s9, %s691_s11 }
   0x8   : > { %p30_p5 = scmp.eq.s32.totalorder %s27_s13, 0  ;;  %p646_p6 = por %p71_p4, %p39_p1 }
   0x9   : > { %p395_p7 = scmp.ge.s32.totalorder %s591_s10, 2 }
   0xa   : > { %s651_s16 = scalar_select %p30_p5, %s579_s7, %s32_s14  }
   0xb   : > { %93 = sbr.rel (%p395_p7) target bundleno = 35 (0x23), region = 16 }
  0x12   : > { %96 = sbr.rel (!%p41_p3) target bundleno = 35 (0x23), region = 20  ;;  %s98_s17 = sand.u32 (%p41_p3), 1, %s579_s7  }
  0x13   : > { %s412_s18 = sshll.u32 (%p41_p3), %s587_s9, 3  ;;  %s396_s19 = sshll.u32 (%p41_p3), %s98_s17, 4 }
  0x14   : > { %s108_s22 = scalar_lea.vmem (%p41_p3), %s683_s0, %s412_s18   ;;  %s100_s23 = scalar_lea.vmem (%p41_p3), [#allocation2], %s396_s19  }
  0x15   : > { %s593_s24 = smov (%p41_p3), 0  }
  0x19 LB: >> { %v126_v0 = vld [vmem:[%s108_s22] sm:$0xf]  ;;  %v128_v1 = vld [vmem:[%s108_s22 + $0x4] sm:$0xf]  ;;  %s120_s24 = sadd.s32 1, %s595_s24   ;;  %s595_s24 = sphi %s593_s24, %s120_s24  }
  0x1a   : >> { %127 = vst [vmem:[%s100_s23] sm:$0xf] %v126_v0  ;;  %129 = vst [vmem:[%s100_s23 + $0x8] sm:$0xf] %v128_v1  ;;  %p119_p8 = scmp.ge.s32.totalorder %s120_s24, 1 }
  0x1c   : > { %122 = sbr.rel (!%p119_p8) target bundleno = 25 (0x19), region = 137 }
  0x23 PF: > { %p401_p9 = scmp.ge.s32.totalorder %s591_s10, 1  ;;  %p178_p10 = scmp.lt.s32.totalorder %s591_s10, 3 }
  0x25   : > { %p179_p11 = pnand %p401_p9, %p178_p10 }
  0x26   : > { %s185_s25 = sand.u32 (!%p179_p11), 1, %s575_s6  }
  0x27   : > { %182 = sbr.rel (%p179_p11) target bundleno = 81 (0x51), region = 61  ;;  %s402_s26 = sshll.u32 (!%p179_p11), %s185_s25, 4 }
  0x28   : > { %s187_s27 = scalar_lea.vmem (!%p179_p11), [#allocation2], %s402_s26  ;;  %s403_s28 = sshll.u32 (!%p179_p11), %s185_s25, 3 }
  0x29   : > { %v404_v2 = vld [vmem:[%s187_s27 + $0x8] sm:$0xff] (!%p179_p11)  ;;  %v209_v6 = vld [vmem:[%s187_s27] sm:$0xff] (!%p179_p11)  ;;  %s202_s29 = scalar_lea.vmem (!%p179_p11), [#allocation3], %s403_s28  }
  0x2a   : > { %v405_v3 = vmul.f32 (!%p179_p11), -1.442695, %v404_v2 }
  0x2c   : > { %517 = vpow2.f32 (!%p179_p11), %v405_v3 }
  0x2e   : > { %s407_s30 = sshll.u32 (%p646_p6), %s583_s8, 2  ;;  %s597_s5 = smov (%p646_p6), 0  }
  0x2f   : > { %s233_s4 = scalar_lea.vmem (%p646_p6), %s684_s1, %s407_s30  }
  0x36   : > { %v518_v4 = vpop.eup %517 }
  0x37   : > { %v215_v5 = vadd.f32 1.0, %v518_v4 }
  0x39   : > { %519 = vrcp.f32 %v215_v5 }
  0x40   : > { %226 = sbr.rel (!%p646_p6) target bundleno = 81 (0x51), region = 69 }
  0x43   : > { %v520_v7 = vpop.eup %519 }
  0x44   : > { %v218_v8 = vmul.f32 %v520_v7, %v209_v6 }
  0x46   : > { %219 = vst [vmem:[%s202_s29] sm:$0xff] %v218_v8 }
  0x47 LB: >> { %s245_s5 = sadd.s32 1, %s599_s5   ;;  %s599_s5 = sphi %s597_s5, %s245_s5  }
  0x48   : >> { %p244_p12 = scmp.ge.s32.totalorder %s245_s5, 1 }
  0x4a   : > { %247 = sbr.rel (!%p244_p12) target bundleno = 71 (0x47), region = 148 }
  0x4d   : >> { %v251_v9 = vld [vmem:[%s202_s29] sm:$0xf] }
  0x4e   : >> { %252 = vst [vmem:[%s233_s4] sm:$0xf] %v251_v9 }
  0x51 PF: > { %s11_s10 = sadd.s32 1, %s591_s10   ;;  %s686_s6 = smov %s579_s7 }
  0x52   : > { %p8_p13 = scmp.ge.s32.totalorder %s11_s10, 4   ;;  %s687_s7 = smov %s651_s16 }
  0x53   : > { %s688_s8 = smov %s587_s9  ;;  %s689_s9 = smov %s691_s11 }
  0x54   :  { %10 = sbr.rel (!%p8_p13) target bundleno = 3 (0x3), region = 159 }

</bundles_post_ra>
